<compile_context>
chip_gen: v6e
topology: v6e:2x2x1
jax: 0.10.0
libtpu: 0.0.40
codegen_flags: <defaults>
</compile_context>

<pallas_src>
import jax
import jax.numpy as jnp
from jax.experimental import pallas as pl
from jax.experimental.pallas import tpu as pltpu


# ----------------------------- helpers --------------------------------------

def _prod(xs):
    p = 1
    for s in xs:
        p *= int(s)
    return p


def _round_up(n, m):
    return -(-n // m) * m


def _ceil_div(n, m):
    return -(-n // m)


def _sublane_align(itemsize):
    if itemsize >= 4:
        return 8
    if itemsize == 2:
        return 16
    return 32


def _vmem_capacity_bytes():
    try:
        return int(pltpu.get_tpu_info().vmem_capacity_bytes)
    except Exception:
        return 64 * 1024 * 1024  # conservative (v7x per-TC)


def _vmem_limit_bytes(block_elems, itemsize):
    """Scoped VMEM limit: double-buffered in/out blocks + f32 temps + headroom."""
    cap = _vmem_capacity_bytes()
    needed = 4 * block_elems * itemsize + 6 * block_elems * 4 + (4 << 20)
    return int(min(cap - (8 << 20), max(needed, 8 << 20)))


def _block_budget_elems(itemsize, min_elems):
    """Generation-derived block budget in (f32-sized) elements."""
    cap = _vmem_capacity_bytes()
    target_elems = max(2 << 20, cap // 16) // 4           # ~4 MiB v7x, ~8 MiB v5e/v6e
    per_elem_bytes = 4 * itemsize + 24                      # 2 in + 2 out bufs + f32 temps
    max_elems = max(min_elems, (cap - (12 << 20)) // per_elem_bytes)
    return int(min(target_elems, max_elems))


def _choose_row_tile(rows, elems_per_row, itemsize, align):
    """Row-tile for the last-dim kernel: VMEM-budgeted, sublane-aligned, ragged ok."""
    budget = _block_budget_elems(itemsize, align * elems_per_row)
    t = max(1, budget // max(1, elems_per_row))
    t = max(align, (t // align) * align)
    rows_rounded = _round_up(rows, align)
    t = min(t, rows_rounded)
    # Give the 2 TCs on v7x at least 2 grid steps when there is real work;
    # the one extra ~0.35 us step is noise on single-TC chips.
    if t >= rows_rounded and rows * elems_per_row * 4 >= (4 << 20):
        t = max(align, _round_up(_ceil_div(rows, 2), align))
    return int(t)


# ----------------------------- kernels --------------------------------------

def _softmax_lastdim_kernel(x_ref, o_ref):
    # x_ref / o_ref: (TILE_ROWS, D) tile in VMEM; softmax over lanes (axis -1).
    x = x_ref[...].astype(jnp.float32)
    m = jnp.max(x, axis=-1, keepdims=True)
    e = jnp.exp(x - m)
    s = jnp.sum(e, axis=-1, keepdims=True)
    o_ref[...] = (e / s).astype(o_ref.dtype)


def _softmax_middim_kernel(x_ref, o_ref):
    # x_ref / o_ref: (1, R, TILE_INNER) block; softmax over the R axis.
    # All math is done on a 2-D (R, TILE_INNER) slab: a plain sublane-axis
    # reduction (R is guaranteed to be a multiple of the sublane packing).
    x = x_ref[...].astype(jnp.float32)[0]          # (R, TI)
    m = jnp.max(x, axis=0, keepdims=True)          # (1, TI)
    e = jnp.exp(x - m)
    s = jnp.sum(e, axis=0, keepdims=True)
    o_ref[...] = ((e / s).astype(o_ref.dtype))[None]


# ----------------------------- wrappers -------------------------------------

def pallas_softmax_lastdim(x):
    """Softmax over the last axis of x (any rank)."""
    orig_shape = x.shape
    D = int(orig_shape[-1])
    rows = _prod(orig_shape[:-1])
    itemsize = jnp.dtype(x.dtype).itemsize
    x2 = x.reshape(rows, D)

    align = _sublane_align(itemsize)
    tr = _choose_row_tile(rows, D, itemsize, align)
    grid = (pl.cdiv(rows, tr),)
    block_elems = tr * D

    out2 = pl.pallas_call(
        _softmax_lastdim_kernel,
        out_shape=jax.ShapeDtypeStruct((rows, D), x.dtype),
        grid=grid,
        in_specs=[pl.BlockSpec((tr, D), lambda i: (i, 0))],
        out_specs=pl.BlockSpec((tr, D), lambda i: (i, 0)),
        compiler_params=pltpu.CompilerParams(
            dimension_semantics=("parallel",),
            vmem_limit_bytes=_vmem_limit_bytes(block_elems, itemsize),
        ),
        cost_estimate=pl.CostEstimate(
            flops=5 * rows * D,
            transcendentals=rows * D,
            bytes_accessed=2 * rows * D * itemsize,
        ),
    )(x2)
    return out2.reshape(orig_shape)


def pallas_softmax_middim(x, dim):
    """Softmax over a non-last axis."""
    shape = x.shape
    itemsize = jnp.dtype(x.dtype).itemsize
    align = _sublane_align(itemsize)
    R = int(shape[dim])

    if R % align != 0:
        # Unaligned reduction extent: route through the proven last-dim kernel.
        # TODO(synk): transpose-free handling of sublane-unaligned R.
        xt = jnp.moveaxis(x, dim, -1)
        out = pallas_softmax_lastdim(xt)
        return jnp.moveaxis(out, -1, dim)

    outer = _prod(shape[:dim])
    inner = _prod(shape[dim + 1:])
    x3 = x.reshape(outer, R, inner)

    # Tile `inner` (lane axis) in multiples of 128, VMEM-budgeted.
    budget = _block_budget_elems(itemsize, R * 128)
    cols_budget = max(128, budget // R)
    if inner <= 128 or cols_budget >= inner:
        ti = inner
    else:
        ti = (cols_budget // 128) * 128
    # Feed both v7x TensorCores when the grid would otherwise be a single step.
    if outer == 1 and ti >= inner and inner >= 256 and outer * R * inner * 4 >= (4 << 20):
        ti = _round_up(_ceil_div(inner, 2), 128)

    n_inner = pl.cdiv(inner, ti)
    grid = (outer, n_inner)
    block_elems = R * ti

    out3 = pl.pallas_call(
        _softmax_middim_kernel,
        out_shape=jax.ShapeDtypeStruct((outer, R, inner), x.dtype),
        grid=grid,
        in_specs=[pl.BlockSpec((1, R, ti), lambda o, i: (o, 0, i))],
        out_specs=pl.BlockSpec((1, R, ti), lambda o, i: (o, 0, i)),
        compiler_params=pltpu.CompilerParams(
            dimension_semantics=("parallel", "parallel"),
            vmem_limit_bytes=_vmem_limit_bytes(block_elems, itemsize),
        ),
        cost_estimate=pl.CostEstimate(
            flops=5 * outer * R * inner,
            transcendentals=outer * R * inner,
            bytes_accessed=2 * outer * R * inner * itemsize,
        ),
    )(x3)
    return out3.reshape(shape)


class SoftMax:
    """JAX/Pallas equivalent of the PyTorch SoftMax module."""

    def __init__(self, dim=-1):
        self.dim = dim

    def __call__(self, x):
        nd = x.ndim
        dim = self.dim % nd
        if dim == nd - 1:
            return pallas_softmax_lastdim(x)
        return pallas_softmax_middim(x, dim)

    def __repr__(self):
        return f"{self.__class__.__name__}(dim={self.dim})"


if __name__ == "__main__":
    key = jax.random.PRNGKey(0)
    k1, k2 = jax.random.split(key)

    # Small NCHW-style input: batch=2, channels=4, H=8, W=32.
    x = jax.random.normal(k1, (2, 4, 8, 32), dtype=jnp.float32)

    # Default module behaviour: softmax over the last dim.
    layer = SoftMax(dim=-1)
    y = jax.block_until_ready(layer(x))
    ref = jax.nn.softmax(x, axis=-1)
    assert y.shape == x.shape and y.dtype == x.dtype
    assert float(jnp.max(jnp.abs(y - ref))) < 1e-5

    # Softmax over channels (R=4, sublane-unaligned -> moveaxis + last-dim kernel).
    layer1 = SoftMax(dim=1)
    y1 = jax.block_until_ready(layer1(x))
    ref1 = jax.nn.softmax(x, axis=1)
    assert y1.shape == x.shape and y1.dtype == x.dtype
    assert float(jnp.max(jnp.abs(y1 - ref1))) < 1e-5

    # Softmax over an aligned middle axis (R=8 -> transpose-free mid-dim kernel).
    x2 = jax.random.normal(k2, (2, 8, 4, 32), dtype=jnp.float32)
    y2 = jax.block_until_ready(SoftMax(dim=1)(x2))
    ref2 = jax.nn.softmax(x2, axis=1)
    assert y2.shape == x2.shape and y2.dtype == x2.dtype
    assert float(jnp.max(jnp.abs(y2 - ref2))) < 1e-5

    print("KERNEL_OK")
</pallas_src>

<mosaic_0001>
module attributes {stable_mosaic.version = 11 : i64} {
  func.func @_softmax_lastdim_kernel(%arg0: i32, %arg1: memref<64x32xf32, #tpu.memory_space<vmem>>, %arg2: memref<64x32xf32, #tpu.memory_space<vmem>>) attributes {dimension_semantics = [#tpu.dimension_semantics<parallel>], iteration_bounds = array<i64: 1>, scalar_prefetch = 0 : i64, scratch_operands = 0 : i64, tpu.core_type = #tpu.core_type<tc>, window_params = [{transform_indices = @transform_0, window_bounds = array<i64: 64, 32>}, {transform_indices = @transform_1, window_bounds = array<i64: 64, 32>}]} {
    %c0 = arith.constant 0 : index
    %c0_0 = arith.constant 0 : index
    %0 = vector.load %arg1[%c0, %c0_0] : memref<64x32xf32, #tpu.memory_space<vmem>>, vector<64x32xf32>
    %cst = arith.constant dense<0xFF800000> : vector<64xf32>
    %1 = vector.multi_reduction <maximumf>, %0, %cst [1] : vector<64x32xf32> to vector<64xf32>
    %2 = vector.shape_cast %1 : vector<64xf32> to vector<64x1xf32>
    %3 = vector.broadcast %2 : vector<64x1xf32> to vector<64x32xf32>
    %4 = arith.subf %0, %3 : vector<64x32xf32>
    %5 = math.exp %4 : vector<64x32xf32>
    %cst_1 = arith.constant dense<0.000000e+00> : vector<64xf32>
    %6 = vector.multi_reduction <add>, %5, %cst_1 [1] : vector<64x32xf32> to vector<64xf32>
    %7 = vector.shape_cast %6 : vector<64xf32> to vector<64x1xf32>
    %8 = vector.broadcast %7 : vector<64x1xf32> to vector<64x32xf32>
    %9 = arith.divf %5, %8 : vector<64x32xf32>
    %c0_2 = arith.constant 0 : index
    %c0_3 = arith.constant 0 : index
    %10 = vector.load %arg2[%c0_2, %c0_3] : memref<64x32xf32, #tpu.memory_space<vmem>>, vector<64x32xf32>
    tpu.vector_store %arg2[%c0_2, %c0_3], %9 {strides = array<i32>} : memref<64x32xf32, #tpu.memory_space<vmem>>, vector<64x32xf32>,
    return
  }
  func.func @transform_0(%arg0: i32) -> (i32, i32) {
    %c0_i32 = arith.constant 0 : i32
    %c0_i32_0 = arith.constant 0 : i32
    return %arg0, %c0_i32 : i32, i32
  }
  func.func @transform_1(%arg0: i32) -> (i32, i32) {
    %c0_i32 = arith.constant 0 : i32
    %c0_i32_0 = arith.constant 0 : i32
    return %arg0, %c0_i32 : i32, i32
  }
}

</mosaic_0001>

<bundles_post_ra>
// kernel: tpu_custom_call.1
= control target key start
LH: loop header
LB: loop body
LE: loop exit
PB: predicated region body
PF: predicated region fallthrough
CT: control target
= control target key end

     0   :  { %vm16_vm0 = vcmask 261120   ;;  %s231_s0 = inlined_call_operand.vmem [shape: f32[64,32], index: 0, kind: input, shape index: {}]   ;;  %s232_s1 = inlined_call_operand.vmem [shape: f32[64,32], index: 1, kind: output, shape index: {}]  }
   0x1   :  { %v8_v0 = vld [vmem:[%s231_s0] sm:$0xff]  ;;  %v10_v1 = vld [vmem:[%s231_s0 + $0x10] sm:$0xff]  ;;  %v9_v2 = vld [vmem:[%s231_s0 + $0x8] sm:$0xff] }
   0x2   :  { %v17_v3 = vsel %vm16_vm0, %v8_v0, -inf  ;;  %v23_v4 = vsel %vm16_vm0, %v10_v1, -inf  ;;  %v11_v5 = vld [vmem:[%s231_s0 + $0x18] sm:$0xff]  ;;  %v20_v6 = vsel %vm16_vm0, %v9_v2, -inf  ;;  %v12_v8 = vld [vmem:[%s231_s0 + $0x20] sm:$0xff]  ;;  %v13_v9 = vld [vmem:[%s231_s0 + $0x28] sm:$0xff] }
   0x3   :  { %18 = vmax.xlane.f32.xlu0 %v17_v3  ;;  %24 = vmax.xlane.f32.xlu1 %v23_v4  ;;  %v26_v7 = vsel %vm16_vm0, %v11_v5, -inf  ;;  %v29_v10 = vsel %vm16_vm0, %v12_v8, -inf  ;;  %v32_v11 = vsel %vm16_vm0, %v13_v9, -inf  ;;  %v14_v12 = vld [vmem:[%s231_s0 + $0x30] sm:$0xff]  ;;  %v15_v13 = vld [vmem:[%s231_s0 + $0x38] sm:$0xff] }
   0x4   :  { %v35_v14 = vsel %vm16_vm0, %v14_v12, -inf  ;;  %v38_v15 = vsel %vm16_vm0, %v15_v13, -inf }
   0x7   :  { %21 = vmax.xlane.f32.xlu0 %v20_v6  ;;  %27 = vmax.xlane.f32.xlu1 %v26_v7 }
   0xb   :  { %30 = vmax.xlane.f32.xlu0 %v29_v10  ;;  %33 = vmax.xlane.f32.xlu1 %v32_v11 }
   0xf   :  { %36 = vmax.xlane.f32.xlu0 %v35_v14  ;;  %39 = vmax.xlane.f32.xlu1 %v38_v15 }
  0x8c   :  { %v19_v16 = vpop.xlane.xlu0 %18  ;;  %v25_v17 = vpop.xlane.xlu1 %24 }
  0x8d   :  { %v41_v18 = vsub.f32 %v8_v0, %v19_v16  ;;  %v43_v19 = vsub.f32 %v10_v1, %v25_v17 }
  0x8f   :  { %v49_v20 = vmul.f32 1.442695, %v41_v18  ;;  %v53_v21 = vmul.f32 1.442695, %v43_v19 }
  0x90   :  { %v22_v22 = vpop.xlane.xlu0 %21  ;;  %v28_v23 = vpop.xlane.xlu1 %27 }
  0x91   :  { %117 = vpow2.f32 %v49_v20  ;;  %v42_v24 = vsub.f32 %v9_v2, %v22_v22  ;;  %v44_v25 = vsub.f32 %v11_v5, %v28_v23 }
  0x92   :  { %119 = vpow2.f32 %v53_v21 }
  0x93   :  { %v51_v26 = vmul.f32 1.442695, %v42_v24  ;;  %v55_v27 = vmul.f32 1.442695, %v44_v25 }
  0x94   :  { %v31_v28 = vpop.xlane.xlu0 %30  ;;  %v34_v29 = vpop.xlane.xlu1 %33 }
  0x95   :  { %121 = vpow2.f32 %v51_v26  ;;  %v45_v30 = vsub.f32 %v12_v8, %v31_v28  ;;  %v46_v31 = vsub.f32 %v13_v9, %v34_v29 }
  0x96   :  { %123 = vpow2.f32 %v55_v27 }
  0x97   :  { %v57_v32 = vmul.f32 1.442695, %v45_v30  ;;  %v59_v33 = vmul.f32 1.442695, %v46_v31 }
  0x98   :  { %v37_v34 = vpop.xlane.xlu0 %36  ;;  %v40_v35 = vpop.xlane.xlu1 %39 }
  0x99   :  { %125 = vpow2.f32 %v57_v32  ;;  %v47_v36 = vsub.f32 %v14_v12, %v37_v34  ;;  %v48_v37 = vsub.f32 %v15_v13, %v40_v35 }
  0x9a   :  { %127 = vpow2.f32 %v59_v33 }
  0x9b   :  { %v61_v38 = vmul.f32 1.442695, %v47_v36  ;;  %v63_v39 = vmul.f32 1.442695, %v48_v37 }
  0x9d   :  { %129 = vpow2.f32 %v61_v38 }
  0x9e   :  { %v118_v40 = vpop.eup %117  ;;  %131 = vpow2.f32 %v63_v39 }
  0x9f   :  { %v120_v41 = vpop.eup %119  ;;  %v65_v42 = vsel %vm16_vm0, %v118_v40, 0.0 }
  0xa0   :  { %66 = vadd.xlane.f32.xlu0 %v65_v42  ;;  %v71_v43 = vsel %vm16_vm0, %v120_v41, 0.0 }
  0xa2   :  { %v122_v44 = vpop.eup %121 }
  0xa3   :  { %v124_v45 = vpop.eup %123  ;;  %v68_v46 = vsel %vm16_vm0, %v122_v44, 0.0 }
  0xa4   :  { %72 = vadd.xlane.f32.xlu0 %v71_v43  ;;  %69 = vadd.xlane.f32.xlu1 %v68_v46  ;;  %v74_v47 = vsel %vm16_vm0, %v124_v45, 0.0 }
  0xa6   :  { %v126_v48 = vpop.eup %125 }
  0xa7   :  { %v128_v49 = vpop.eup %127  ;;  %v77_v50 = vsel %vm16_vm0, %v126_v48, 0.0 }
  0xa8   :  { %75 = vadd.xlane.f32.xlu1 %v74_v47  ;;  %78 = vadd.xlane.f32.xlu0 %v77_v50  ;;  %v80_v51 = vsel %vm16_vm0, %v128_v49, 0.0 }
  0xaa   :  { %v130_v52 = vpop.eup %129 }
  0xab   :  { %v132_v53 = vpop.eup %131  ;;  %v83_v54 = vsel %vm16_vm0, %v130_v52, 0.0 }
  0xac   :  { %81 = vadd.xlane.f32.xlu1 %v80_v51  ;;  %84 = vadd.xlane.f32.xlu0 %v83_v54  ;;  %v86_v55 = vsel %vm16_vm0, %v132_v53, 0.0 }
  0xb0   :  { %87 = vadd.xlane.f32.xlu1 %v86_v55 }
 0x129   :  { %v67_v56 = vpop.xlane.xlu0 %66 }
 0x12a   :  { %133 = vrcp.f32 %v67_v56 }
 0x12d   :  { %v70_v57 = vpop.xlane.xlu1 %69  ;;  %v73_v58 = vpop.xlane.xlu0 %72 }
 0x12e   :  { %135 = vrcp.f32 %v70_v57 }
 0x12f   :  { %137 = vrcp.f32 %v73_v58 }
 0x131   :  { %v76_v59 = vpop.xlane.xlu1 %75  ;;  %v79_v60 = vpop.xlane.xlu0 %78 }
 0x132   :  { %139 = vrcp.f32 %v76_v59 }
 0x133   :  { %141 = vrcp.f32 %v79_v60 }
 0x135   :  { %v82_v61 = vpop.xlane.xlu1 %81  ;;  %v85_v62 = vpop.xlane.xlu0 %84 }
 0x136   :  { %143 = vrcp.f32 %v82_v61 }
 0x137   :  { %v134_v63 = vpop.eup %133  ;;  %145 = vrcp.f32 %v85_v62 }
 0x138   :  { %v90_v0 = vmul.f32 %v134_v63, %v118_v40 }
 0x139   :  { %v88_v1 = vpop.xlane.xlu1 %87 }
 0x13a   :  { %105 = vst.msk [vmem:[%s232_s1] sm:$0xff] %vm16_vm0, %v90_v0  ;;  %147 = vrcp.f32 %v88_v1 }
 0x13b   :  { %v136_v2 = vpop.eup %135 }
 0x13c   :  { %v138_v3 = vpop.eup %137  ;;  %v92_v4 = vmul.f32 %v136_v2, %v122_v44 }
 0x13d   :  { %v94_v5 = vmul.f32 %v138_v3, %v120_v41 }
 0x13e   :  { %106 = vst.msk [vmem:[%s232_s1 + $0x8] sm:$0xff] %vm16_vm0, %v92_v4 }
 0x13f   :  { %v140_v6 = vpop.eup %139  ;;  %107 = vst.msk [vmem:[%s232_s1 + $0x10] sm:$0xff] %vm16_vm0, %v94_v5 }
 0x140   :  { %v142_v7 = vpop.eup %141  ;;  %v96_v8 = vmul.f32 %v140_v6, %v124_v45 }
 0x141   :  { %v98_v9 = vmul.f32 %v142_v7, %v126_v48 }
 0x142   :  { %108 = vst.msk [vmem:[%s232_s1 + $0x18] sm:$0xff] %vm16_vm0, %v96_v8 }
 0x143   :  { %v144_v10 = vpop.eup %143  ;;  %109 = vst.msk [vmem:[%s232_s1 + $0x20] sm:$0xff] %vm16_vm0, %v98_v9 }
 0x144   :  { %v146_v11 = vpop.eup %145  ;;  %v100_v12 = vmul.f32 %v144_v10, %v128_v49 }
 0x145   :  { %v102_v13 = vmul.f32 %v146_v11, %v130_v52 }
 0x146   :  { %110 = vst.msk [vmem:[%s232_s1 + $0x28] sm:$0xff] %vm16_vm0, %v100_v12 }
 0x147   :  { %v148_v14 = vpop.eup %147  ;;  %111 = vst.msk [vmem:[%s232_s1 + $0x30] sm:$0xff] %vm16_vm0, %v102_v13 }
 0x148   :  { %v104_v15 = vmul.f32 %v148_v14, %v132_v53 }
 0x14a   :  { %112 = vst.msk [vmem:[%s232_s1 + $0x38] sm:$0xff] %vm16_vm0, %v104_v15 }

</bundles_post_ra>
